<compile_context>
chip_gen: v7x
topology: tpu7x:2x2x1
jax: 0.10.0
libtpu: 0.0.40
codegen_flags: <defaults>
</compile_context>

<pallas_src>
import functools

import jax
import jax.numpy as jnp
from jax.experimental import pallas as pl
from jax.experimental.pallas import tpu as pltpu

BN_EPS = 1e-5   # torch.nn.BatchNorm1d default eps
LANE = 128


def bag_sum_kernel(starts_ref, lens_ref, x_ref, w_ref, b_ref, o_ref, *, n_items):
    """Grid step (split c, tile i): Linear+ReLU on a (TILE_N, F) item tile, then a masked
    segment-sum into this split's resident (1, T, B_pad) partial-sum output block.

    starts_ref: (T, 1) int32      first item index of each bag
    lens_ref:   (T, 1) int32      number of items in each bag (may be 0)
    x_ref:      (TILE_N, F)       item-feature tile (any float dtype; cast to bf16)
    w_ref:      (F, B_pad) bf16   Linear weight (transposed, lane-padded to 128)
    b_ref:      (1, B_pad) f32    Linear bias
    o_ref:      (1, T, B_pad) f32 per-split partial bag sums (resident across the i axis)
    """
    split = pl.program_id(0)
    step = pl.program_id(1)
    tile_n = x_ref.shape[0]
    n_bags = starts_ref.shape[0]
    # Logical row offset of this tile (independent of the clamped data index used by the
    # BlockSpec index_map, so clamped / overshoot tiles can never double-count rows).
    row0 = (split * pl.num_programs(1) + step) * tile_n

    # 1) Linear + ReLU (bf16 operands on the MXU, f32 accumulation).
    y = jnp.dot(x_ref[...].astype(jnp.bfloat16), w_ref[...],
                preferred_element_type=jnp.float32)
    y = jnp.maximum(y + b_ref[...], 0.0)                                  # (TILE_N, B_pad)

    # 2) Zero rows past the real item count.  Mandatory: the last tile of each split is
    #    ragged and its out-of-range rows hold garbage; sel==0 alone is not enough since
    #    0 * NaN/Inf would still poison the accumulator.
    local_row = jax.lax.broadcasted_iota(jnp.int32, (tile_n, 1), 0)
    y = jnp.where(row0 + local_row < n_items, y, 0.0)

    # 3) Segment-sum as a masked matmul with bf16 operands (sel exactly 0/1) and f32
    #    accumulation -- halves MXU weight-push traffic vs the previous f32 matmul.
    row_ids = row0 + jax.lax.broadcasted_iota(jnp.int32, (n_bags, tile_n), 1)  # (T, TILE_N)
    starts = starts_ref[...]                                              # (T, 1)
    lens = lens_ref[...]                                                  # (T, 1)
    sel = jnp.logical_and(row_ids >= starts, row_ids < starts + lens)
    part = jnp.dot(sel.astype(jnp.bfloat16), y.astype(jnp.bfloat16),
                   preferred_element_type=jnp.float32)                    # (T, B_pad)

    # 4) Accumulate directly into the resident output block (no extra VMEM scratch).
    @pl.when(step == 0)
    def _():
        o_ref[...] = part[None]

    @pl.when(step != 0)
    def _():
        o_ref[...] += part[None]


def bag_bn_kernel(part_ref, lens_ref, gamma_ref, beta_ref, o_ref):
    """Single-step epilogue: combine per-split partial sums, per-bag mean (exact divide),
    BatchNorm1d training-mode batch statistics (biased variance) with affine gamma/beta."""
    sums = jnp.sum(part_ref[...], axis=0)                                 # (T, B_pad)
    lens_f = jnp.maximum(lens_ref[...].astype(jnp.float32), 1.0)          # empty bag -> 0 row
    agg = sums / lens_f                                                   # exact, runs once
    mu = jnp.mean(agg, axis=0, keepdims=True)
    d = agg - mu
    var = jnp.mean(d * d, axis=0, keepdims=True)
    o_ref[...] = gamma_ref[...] * (d * jax.lax.rsqrt(var + BN_EPS)) + beta_ref[...]


def _round_up(v, m):
    return ((v + m - 1) // m) * m


def _default_vmem_budget_bytes():
    """~3/4 of physical VMEM: ~96 MiB on v5e/v6e (128 MiB), ~48 MiB on v7x (64 MiB)."""
    cap = None
    try:
        cap = getattr(pltpu.get_tpu_info(), "vmem_capacity_bytes", None)
    except Exception:
        cap = None
    if not cap:
        cap = 64 * 1024 * 1024   # conservative fallback (v7x-sized)
    return (int(cap) * 3) // 4


def _choose_tile_n(n_items, feat_len, x_itemsize, n_bags, b_pad, num_splits,
                   vmem_budget_bytes):
    """Largest power-of-two multiple of 128 whose VMEM working set fits the budget.

    Accounts for lane padding of the streamed x tile (a (tile_n, F) block occupies
    tile_n * round_up(F, 128) * itemsize bytes of VMEM) and double-buffering of the
    resident parameter / output blocks."""
    f_lane = _round_up(feat_len, LANE)
    t_sub = _round_up(n_bags, 8)
    fixed = 2 * (feat_len * b_pad * 2          # W (bf16), double-buffered
                 + b_pad * 4                   # bias
                 + 2 * t_sub * LANE * 4        # starts, lens (sublane/lane-padded s32)
                 + t_sub * b_pad * 4)          # (1, T, B_pad) output block
    budget = (vmem_budget_bytes * 3) // 4      # headroom for compiler-internal scratch
    cap = min(8192, max(128, _round_up(pl.cdiv(max(n_items, 1), num_splits), 128)))
    tile, best = 128, 128
    while tile <= cap:
        per_tile = (2 * tile * f_lane * x_itemsize   # double-buffered x tile (lane-padded)
                    + tile * b_pad * 4               # y (f32)
                    + tile * b_pad * 2               # y (bf16 copy for the segment matmul)
                    + t_sub * tile * 4               # row_ids / sel build
                    + t_sub * tile * 2)              # sel (bf16)
        if fixed + per_tile <= budget:
            best = tile
        else:
            break
        tile *= 2
    return best


def bag_input_forward(x, bags_len, w, b, gamma, beta, *,
                      tile_n=None, num_splits=2, x_buffers=2, vmem_budget_bytes=None):
    """x: (N, F) item features (pass bf16 for the fast path -- no host-side copy is made);
    bags_len: (T,) per-bag item counts with sum == N.
    Returns (T, BAG_SIZE) f32, matching BagInput.forward (ReLU act, seg_mean_vec agg,
    BatchNorm1d training-mode batch statistics)."""
    n_items, feat_len = x.shape
    bag_size = w.shape[1]
    t = bags_len.shape[0]
    b_pad = _round_up(max(bag_size, LANE), LANE)
    x_itemsize = jnp.dtype(x.dtype).itemsize

    if vmem_budget_bytes is None:
        vmem_budget_bytes = _default_vmem_budget_bytes()
    if tile_n is None:
        tile_n = _choose_tile_n(n_items, feat_len, x_itemsize, t, b_pad, num_splits,
                                vmem_budget_bytes)

    n_row_blocks = max(int(pl.cdiv(max(n_items, 1), tile_n)), 1)
    tiles_per_split = max(int(pl.cdiv(n_row_blocks, num_splits)), 1)

    # Lane-pad the BAG_SIZE axis to 128 so VPU/MXU lanes are dense and stores are
    # unmasked vst; padded columns stay exactly zero and are sliced off below.
    w_p = jnp.pad(w.astype(jnp.bfloat16), ((0, 0), (0, b_pad - bag_size)))
    b_p = jnp.pad(b.astype(jnp.float32), (0, b_pad - bag_size)).reshape(1, b_pad)
    g_p = jnp.pad(gamma.astype(jnp.float32), (0, b_pad - bag_size)).reshape(1, b_pad)
    be_p = jnp.pad(beta.astype(jnp.float32), (0, b_pad - bag_size)).reshape(1, b_pad)

    lens_i = bags_len.astype(jnp.int32)
    starts = (jnp.cumsum(lens_i) - lens_i).reshape(t, 1)
    lens = lens_i.reshape(t, 1)

    # Clamp fully out-of-range block indices (split rounding can overshoot the last
    # block); the in-kernel row mask uses the *logical* row index, so a clamped tile
    # contributes exactly zero rather than double-counting.
    def x_index_map(c, i):
        return (jnp.minimum(c * tiles_per_split + i, n_row_blocks - 1), 0)

    if x_buffers != 2:
        # Optional deeper x prefetch (e.g. pl.Buffered(3) on v7x if DMA is exposed).
        x_spec = pl.BlockSpec((tile_n, feat_len), x_index_map,
                              pipeline_mode=pl.Buffered(x_buffers))
    else:
        x_spec = pl.BlockSpec((tile_n, feat_len), x_index_map)

    cost = pl.CostEstimate(
        flops=2 * num_splits * tiles_per_split * tile_n * b_pad * (feat_len + t),
        transcendentals=0,
        bytes_accessed=(n_items * feat_len * x_itemsize + feat_len * b_pad * 2
                        + b_pad * 4 + 2 * t * 4 + num_splits * t * b_pad * 4),
    )

    partials = pl.pallas_call(
        functools.partial(bag_sum_kernel, n_items=n_items),
        out_shape=jax.ShapeDtypeStruct((num_splits, t, b_pad), jnp.float32),
        grid_spec=pltpu.PrefetchScalarGridSpec(
            num_scalar_prefetch=0,
            grid=(num_splits, tiles_per_split),
            in_specs=[
                pl.BlockSpec((t, 1), lambda c, i: (0, 0)),               # starts
                pl.BlockSpec((t, 1), lambda c, i: (0, 0)),               # lens
                x_spec,                                                  # x tile
                pl.BlockSpec((feat_len, b_pad), lambda c, i: (0, 0)),    # W
                pl.BlockSpec((1, b_pad), lambda c, i: (0, 0)),           # bias
            ],
            out_specs=pl.BlockSpec((1, t, b_pad), lambda c, i: (c, 0, 0)),
        ),
        compiler_params=pltpu.CompilerParams(
            # Leading axis is megacore-parallel (uses both v7x TCs); the item-tile axis
            # is the reduction and must stay "arbitrary".
            dimension_semantics=("parallel", "arbitrary"),
            vmem_limit_bytes=int(vmem_budget_bytes),
        ),
        cost_estimate=cost,
    )(starts, lens, x, w_p, b_p)

    out = pl.pallas_call(
        bag_bn_kernel,
        out_shape=jax.ShapeDtypeStruct((t, b_pad), jnp.float32),
        grid_spec=pltpu.PrefetchScalarGridSpec(
            num_scalar_prefetch=0,
            grid=(1,),
            in_specs=[
                pl.BlockSpec((num_splits, t, b_pad), lambda i: (0, 0, 0)),
                pl.BlockSpec((t, 1), lambda i: (0, 0)),
                pl.BlockSpec((1, b_pad), lambda i: (0, 0)),
                pl.BlockSpec((1, b_pad), lambda i: (0, 0)),
            ],
            out_specs=pl.BlockSpec((t, b_pad), lambda i: (0, 0)),
        ),
        compiler_params=pltpu.CompilerParams(dimension_semantics=("arbitrary",)),
    )(partials, lens, g_p, be_p)

    return out[:, :bag_size]


if __name__ == "__main__":
    BAG_SIZE = 16   # config.BAG_SIZE
    FEAT_LEN = 32   # meta.feat_idx[-1][1]

    # 8 bags with ragged lengths (two empty bags exercise the zero-length path);
    # N=259 items so tile_n=128 with num_splits=2 gives a (2, 2) grid exercising the
    # per-split accumulator, the ragged-tile mask and the clamped overshoot tile.
    bags_len = jnp.array([37, 0, 51, 12, 64, 5, 0, 90], dtype=jnp.int32)
    N = int(bags_len.sum())
    T = int(bags_len.shape[0])

    key = jax.random.PRNGKey(0)
    k1, k2, k3, k4, k5 = jax.random.split(key, 5)
    x = jax.random.normal(k1, (N, FEAT_LEN), dtype=jnp.float32)
    w = 0.1 * jax.random.normal(k2, (FEAT_LEN, BAG_SIZE), dtype=jnp.float32)
    b = 0.1 * jax.random.normal(k3, (BAG_SIZE,), dtype=jnp.float32)
    gamma = 1.0 + 0.05 * jax.random.normal(k4, (BAG_SIZE,), dtype=jnp.float32)
    beta = 0.05 * jax.random.normal(k5, (BAG_SIZE,), dtype=jnp.float32)

    # Caller keeps x in bf16 -> the kernel streams it directly (no host pad/cast copy).
    x_bf = x.astype(jnp.bfloat16)

    out = bag_input_forward(x_bf, bags_len, w, b, gamma, beta, tile_n=128)
    out = jax.block_until_ready(out)
    # Also exercise the auto tile-size / auto VMEM-budget path.
    out_auto = bag_input_forward(x_bf, bags_len, w, b, gamma, beta)
    out_auto = jax.block_until_ready(out_auto)

    # Pure-JAX reference with the same operand roundings the kernel uses (bf16 x, bf16 W,
    # bf16 y fed to the segment sum); remaining error is accumulation order only.
    xb = x_bf.astype(jnp.float32)
    wb = w.astype(jnp.bfloat16).astype(jnp.float32)
    y = jnp.maximum(xb @ wb + b, 0.0)
    y = y.astype(jnp.bfloat16).astype(jnp.float32)
    starts = jnp.cumsum(bags_len) - bags_len
    idx = jnp.arange(N)
    aggs = []
    for ti in range(T):
        m = ((idx >= starts[ti]) & (idx < starts[ti] + bags_len[ti])).astype(jnp.float32)
        aggs.append((m[:, None] * y).sum(0)
                    / jnp.maximum(bags_len[ti].astype(jnp.float32), 1.0))
    agg = jnp.stack(aggs)
    mu = agg.mean(0)
    var = ((agg - mu) ** 2).mean(0)
    ref = gamma * (agg - mu) / jnp.sqrt(var + BN_EPS) + beta

    assert out.shape == (T, BAG_SIZE)
    assert bool(jnp.isfinite(out).all())
    assert jnp.allclose(out, ref, atol=2e-2, rtol=2e-2), "mismatch vs reference"
    assert jnp.allclose(out_auto, ref, atol=2e-2, rtol=2e-2), "auto-tile mismatch vs reference"

    print("KERNEL_OK")
</pallas_src>

<mosaic_0001>
module attributes {stable_mosaic.version = 11 : i64} {
  func.func @bag_sum_kernel(%arg0: i32, %arg1: i32, %arg2: memref<8x1xi32, #tpu.memory_space<vmem>>, %arg3: memref<8x1xi32, #tpu.memory_space<vmem>>, %arg4: memref<128x32xbf16, #tpu.memory_space<vmem>>, %arg5: memref<32x128xbf16, #tpu.memory_space<vmem>>, %arg6: memref<1x128xf32, #tpu.memory_space<vmem>>, %arg7: memref<1x8x128xf32, #tpu.memory_space<vmem>>) attributes {dimension_semantics = [#tpu.dimension_semantics<parallel>, #tpu.dimension_semantics<arbitrary>], iteration_bounds = array<i64: 2, 2>, scalar_prefetch = 0 : i64, scratch_operands = 0 : i64, tpu.core_type = #tpu.core_type<tc>, window_params = [{pipeline_mode = #tpu.pipeline_mode<synchronous>, transform_indices = @transform_0, window_bounds = array<i64: 8, 1>}, {pipeline_mode = #tpu.pipeline_mode<synchronous>, transform_indices = @transform_1, window_bounds = array<i64: 8, 1>}, {transform_indices = @transform_2, window_bounds = array<i64: 128, 32>}, {pipeline_mode = #tpu.pipeline_mode<synchronous>, transform_indices = @transform_3, window_bounds = array<i64: 32, 128>}, {pipeline_mode = #tpu.pipeline_mode<synchronous>, transform_indices = @transform_4, window_bounds = array<i64: 1, 128>}, {transform_indices = @transform_5, window_bounds = array<i64: 1, 8, 128>}]} {
    %c2_i32 = arith.constant 2 : i32
    %0 = arith.muli %arg0, %c2_i32 : i32
    %1 = arith.addi %0, %arg1 : i32
    %c128_i32 = arith.constant 128 : i32
    %2 = arith.muli %1, %c128_i32 : i32
    %c0 = arith.constant 0 : index
    %c0_0 = arith.constant 0 : index
    %3 = vector.load %arg4[%c0, %c0_0] : memref<128x32xbf16, #tpu.memory_space<vmem>>, vector<128x32xbf16>
    %c0_1 = arith.constant 0 : index
    %c0_2 = arith.constant 0 : index
    %4 = vector.load %arg5[%c0_1, %c0_2] : memref<32x128xbf16, #tpu.memory_space<vmem>>, vector<32x128xbf16>
    %cst = arith.constant dense<0.000000e+00> : vector<128x128xf32>
    %5 = tpu.matmul %3, %4, %cst {dimension_numbers = #tpu.dot_dimension_numbers<[1], [0], [0], [1], [0, 0, 1, 1], [], []>} : vector<128x32xbf16>, vector<32x128xbf16>, vector<128x128xf32> -> vector<128x128xf32>
    %c0_3 = arith.constant 0 : index
    %c0_4 = arith.constant 0 : index
    %6 = vector.load %arg6[%c0_3, %c0_4] : memref<1x128xf32, #tpu.memory_space<vmem>>, vector<1x128xf32>
    %7 = vector.broadcast %6 : vector<1x128xf32> to vector<128x128xf32>
    %8 = arith.addf %5, %7 : vector<128x128xf32>
    %cst_5 = arith.constant 0.000000e+00 : f32
    %9 = vector.broadcast %cst_5 : f32 to vector<128x128xf32>
    %10 = arith.maximumf %8, %9 : vector<128x128xf32>
    %11 = tpu.iota {dimensions = array<i32: 0>} : vector<128x1xi32>
    %12 = vector.broadcast %2 : i32 to vector<128x1xi32>
    %13 = arith.addi %12, %11 : vector<128x1xi32>
    %c259_i32 = arith.constant 259 : i32
    %14 = vector.broadcast %c259_i32 : i32 to vector<128x1xi32>
    %15 = arith.cmpi slt, %13, %14 : vector<128x1xi32>
    %cst_6 = arith.constant 0.000000e+00 : f32
    %16 = vector.shape_cast %15 : vector<128x1xi1> to vector<128x1xi1>
    %17 = vector.broadcast %16 : vector<128x1xi1> to vector<128x128xi1>
    %18 = vector.broadcast %cst_6 : f32 to vector<128x128xf32>
    %19 = arith.select %17, %10, %18 : vector<128x128xi1>, vector<128x128xf32>
    %20 = tpu.iota {dimensions = array<i32: 1>} : vector<8x128xi32>
    %21 = vector.broadcast %2 : i32 to vector<8x128xi32>
    %22 = arith.addi %21, %20 : vector<8x128xi32>
    %c0_7 = arith.constant 0 : index
    %c0_8 = arith.constant 0 : index
    %23 = vector.load %arg2[%c0_7, %c0_8] : memref<8x1xi32, #tpu.memory_space<vmem>>, vector<8x1xi32>
    %c0_9 = arith.constant 0 : index
    %c0_10 = arith.constant 0 : index
    %24 = vector.load %arg3[%c0_9, %c0_10] : memref<8x1xi32, #tpu.memory_space<vmem>>, vector<8x1xi32>
    %25 = vector.broadcast %23 : vector<8x1xi32> to vector<8x128xi32>
    %26 = arith.cmpi sge, %22, %25 : vector<8x128xi32>
    %27 = arith.addi %23, %24 : vector<8x1xi32>
    %28 = vector.broadcast %27 : vector<8x1xi32> to vector<8x128xi32>
    %29 = arith.cmpi slt, %22, %28 : vector<8x128xi32>
    %30 = arith.andi %26, %29 : vector<8x128xi1>
    %31 = arith.extui %30 : vector<8x128xi1> to vector<8x128xi32>
    %32 = arith.sitofp %31 : vector<8x128xi32> to vector<8x128xf32>
    %33 = arith.truncf %32 : vector<8x128xf32> to vector<8x128xbf16>
    %34 = arith.truncf %19 : vector<128x128xf32> to vector<128x128xbf16>
    %cst_11 = arith.constant dense<0.000000e+00> : vector<8x128xf32>
    %35 = tpu.matmul %33, %34, %cst_11 {dimension_numbers = #tpu.dot_dimension_numbers<[1], [0], [0], [1], [0, 0, 1, 1], [], []>} : vector<8x128xbf16>, vector<128x128xbf16>, vector<8x128xf32> -> vector<8x128xf32>
    %c0_i32 = arith.constant 0 : i32
    %36 = arith.cmpi eq, %arg1, %c0_i32 : i32
    %37 = arith.extui %36 : i1 to i32
    %c0_i32_12 = arith.constant 0 : i32
    %38 = arith.cmpi ne, %37, %c0_i32_12 : i32
    scf.if %38 {
      %42 = vector.shape_cast %35 : vector<8x128xf32> to vector<1x8x128xf32>
      %c0_15 = arith.constant 0 : index
      %c0_16 = arith.constant 0 : index
      %c0_17 = arith.constant 0 : index
      %43 = vector.load %arg7[%c0_15, %c0_16, %c0_17] : memref<1x8x128xf32, #tpu.memory_space<vmem>>, vector<1x8x128xf32>
      tpu.vector_store %arg7[%c0_15, %c0_16, %c0_17], %42 {strides = array<i32>} : memref<1x8x128xf32, #tpu.memory_space<vmem>>, vector<1x8x128xf32>,
    } else {
    }
    %c0_i32_13 = arith.constant 0 : i32
    %39 = arith.cmpi ne, %arg1, %c0_i32_13 : i32
    %40 = arith.extui %39 : i1 to i32
    %c0_i32_14 = arith.constant 0 : i32
    %41 = arith.cmpi ne, %40, %c0_i32_14 : i32
    scf.if %41 {
      %c0_15 = arith.constant 0 : index
      %c0_16 = arith.constant 0 : index
      %c0_17 = arith.constant 0 : index
      %42 = vector.load %arg7[%c0_15, %c0_16, %c0_17] : memref<1x8x128xf32, #tpu.memory_space<vmem>>, vector<1x8x128xf32>
      %43 = vector.shape_cast %35 : vector<8x128xf32> to vector<1x8x128xf32>
      %44 = arith.addf %42, %43 : vector<1x8x128xf32>
      %c0_18 = arith.constant 0 : index
      %c0_19 = arith.constant 0 : index
      %c0_20 = arith.constant 0 : index
      %45 = vector.load %arg7[%c0_18, %c0_19, %c0_20] : memref<1x8x128xf32, #tpu.memory_space<vmem>>, vector<1x8x128xf32>
      tpu.vector_store %arg7[%c0_18, %c0_19, %c0_20], %44 {strides = array<i32>} : memref<1x8x128xf32, #tpu.memory_space<vmem>>, vector<1x8x128xf32>,
    } else {
    }
    return
  }
  func.func @transform_0(%arg0: i32, %arg1: i32) -> (i32, i32) {
    %c0_i32 = arith.constant 0 : i32
    %c0_i32_0 = arith.constant 0 : i32
    %c0_i32_1 = arith.constant 0 : i32
    return %c0_i32, %c0_i32_0 : i32, i32
  }
  func.func @transform_1(%arg0: i32, %arg1: i32) -> (i32, i32) {
    %c0_i32 = arith.constant 0 : i32
    %c0_i32_0 = arith.constant 0 : i32
    %c0_i32_1 = arith.constant 0 : i32
    return %c0_i32, %c0_i32_0 : i32, i32
  }
  func.func @transform_2(%arg0: i32, %arg1: i32) -> (i32, i32) {
    %c2_i32 = arith.constant 2 : i32
    %0 = arith.muli %arg0, %c2_i32 : i32
    %1 = arith.addi %0, %arg1 : i32
    %c2_i32_0 = arith.constant 2 : i32
    %2 = arith.minsi %1, %c2_i32_0 : i32
    %c0_i32 = arith.constant 0 : i32
    %c0_i32_1 = arith.constant 0 : i32
    return %2, %c0_i32 : i32, i32
  }
  func.func @transform_3(%arg0: i32, %arg1: i32) -> (i32, i32) {
    %c0_i32 = arith.constant 0 : i32
    %c0_i32_0 = arith.constant 0 : i32
    %c0_i32_1 = arith.constant 0 : i32
    return %c0_i32, %c0_i32_0 : i32, i32
  }
  func.func @transform_4(%arg0: i32, %arg1: i32) -> (i32, i32) {
    %c0_i32 = arith.constant 0 : i32
    %c0_i32_0 = arith.constant 0 : i32
    %c0_i32_1 = arith.constant 0 : i32
    return %c0_i32, %c0_i32_0 : i32, i32
  }
  func.func @transform_5(%arg0: i32, %arg1: i32) -> (i32, i32, i32) {
    %c0_i32 = arith.constant 0 : i32
    %c0_i32_0 = arith.constant 0 : i32
    %c0_i32_1 = arith.constant 0 : i32
    return %arg0, %c0_i32, %c0_i32_0 : i32, i32, i32
  }
}

</mosaic_0001>

<bundles_post_ra>
// kernel: tpu_custom_call.1
= control target key start
LH: loop header
LB: loop body
LE: loop exit
PB: predicated region body
PF: predicated region fallthrough
CT: control target
= control target key end

     0   :  { %10 = vsyncpa [#allocation3], 0  ;;  %s1339_s0 = inlined_call_operand.vmem [shape: s32[8,1], index: 0, kind: input, shape index: {}]   ;;  %s1340_s1 = inlined_call_operand.vmem [shape: s32[8,1], index: 1, kind: input, shape index: {}]   ;;  %s1341_s2 = inlined_call_operand.vmem [shape: bf16[259,32], index: 2, kind: input, shape index: {}]   ;;  %s1342_s3 = inlined_call_operand.vmem [shape: bf16[32,128], index: 3, kind: input, shape index: {}]   ;;  %s1343_s4 = inlined_call_operand.vmem [shape: f32[1,128], index: 4, kind: input, shape index: {}]   ;;  %s1344_s5 = inlined_call_operand.hbm [shape: f32[2,8,128], index: 5, kind: output, shape index: {}]  }
   0x1   :  { %12 = vsyncpa [#allocation3 + $0x1], 0  ;;  %s1107_s18 = smov 0   ;;  %s1109_s19 = smov 0  }
   0x2   :  { %s1111_s20 = smov 0   ;;  %s1113_s21 = smov 0  }
   0x3   :  { %s1115_s22 = smov 0   ;;  %s1117_s23 = smov 0  }
   0x4   :  { %s1119_s24 = smov 0   ;;  %s1121_s25 = smov 0  }
   0x5 LB: > { %s766_s26 = sadd.s32 4294967295, %s1070_s25   ;;  %s767_s27 = sadd.s32 4294967294, %s1070_s25   ;;  %s1070_s25 = sphi %s1121_s25, %s18_s25   ;;  %s1066_s24 = sphi %s1119_s24, %s1353_s24   ;;  %s1062_s23 = sphi %s1117_s23, %s1352_s23   ;;  %s1058_s22 = sphi %s1115_s22, %s1351_s22   ;;  %s1054_s21 = sphi %s1113_s21, %s1350_s21   ;;  %s1050_s20 = sphi %s1111_s20, %s1349_s20   ;;  %s1046_s19 = sphi %s1109_s19, %s1348_s19   ;;  %s1042_s18 = sphi %s1107_s18, %s1347_s18  }
   0x6   : > { %s27_s28 = sadd.s32 1, %s1062_s23  ;;  %s30_s29 = sadd.s32 1, %s1066_s24 }
   0x7   : > { %p28_p0 = scmp.ge.s32.totalorder %s27_s28, 2  ;;  %p165_p1 = scmp.ne.s32.totalorder %s1050_s20, %s1046_s19 }
   0x8   : > { %p166_p2 = scmp.eq.s32.totalorder %s766_s26, 3  ;;  %p171_p4 = scmp.ne.s32.totalorder %s1046_s19, %s1042_s18 }
   0x9   : > { %s1355_s28 = smov (%p28_p0, %s27_s28), 0  ;;  %s1357_s29 = smov (!%p28_p0, %s30_s29), %s1066_s24 }
   0xa   : > { %p1156_p3 = por %p166_p2, %p165_p1  ;;  %p32_p5 = scmp.ge.s32.totalorder %s1357_s29, 2 }
   0xb   : > { %p172_p6 = scmp.eq.s32.totalorder %s767_s27, 3  ;;  %p772_p7 = scmp.ge.s32.totalorder %s1070_s25, 1 }
   0xc   : > { %p227_p8 = scmp.lt.s32.totalorder %s1070_s25, 5  ;;  %s1359_s29 = smov (%p32_p5, %s1357_s29), 0 }
   0xd   : > { %p1166_p9 = por %p172_p6, %p171_p4  ;;  %s152_s7 = ssub.s32 %s1066_s24, %s1359_s29 }
   0xe   : > { %p228_p10 = pnand %p772_p7, %p227_p8  ;;  %s155_s8 = sadd.s32 1, %s1050_s20 }
   0xf   : > { %p153_p11 = scmp.eq.s32.totalorder %s152_s7, 0  ;;  %s260_s10 = sand.u32 (!%p228_p10), 1, %s1046_s19   ;;  %v966_v0 = vld [vmem:[%s1342_s3] sm:$0xff] (!%p228_p10)   ;;  %v967_v1 = vld [vmem:[%s1342_s3 + $0x8] sm:$0xff] (!%p228_p10)   ;;  %v1072_v4 = vmov (!%p228_p10), 0   ;;  %vm368_vm0 = vcmask (!%p228_p10), 261120   ;;  %v506_v15 = vlaneseq (!%p228_p10) }
  0x10   : > { %231 = sbr.rel (%p228_p10) target bundleno = 533 (0x215), region = 40  ;;  %s1182_s13 = sshll.u32 (!%p228_p10), %s260_s10, 3  ;;  %850 = vmatprep.subr.bf16.mxu0 (!%p228_p10), %v966_v0  ;;  %v607_v2 = vld [vmem:[%s1339_s0] sm:$0xff] (!%p228_p10)  ;;  %965 = vset.pattern.permute.xlu0 (!%p228_p10), %v1072_v4  ;;  %v1073_v14 = vmov (!%p228_p10), 0.0   ;;  %vm1074_vm1 = vmmov (!%p228_p10), 0  }
  0x11   : > { %s1174_s9 = scalar_select %p153_p11, %s1050_s20, %s155_s8  }
  0x12   : > { %s774_s16 = sshll.u32 (!%p228_p10), %s1058_s22, 1  ;;  %v608_v3 = vld [vmem:[%s1340_s1] sm:$0xff] (!%p228_p10)  ;;  %851 = vmatpush3.bf16.msra.mxu0 (!%p228_p10), %v966_v0  ;;  %610 = vperm.xlu0 (!%p228_p10), %965, %v607_v2   ;;  %v1213_v16 = vshrl.u32 (!%p228_p10), %v506_v15, 7  ;;  %p825_p0 = scmp.ne.s32.totalorder (!%p228_p10), %s1054_s21, 0 }
  0x13   : > { %s1195_s8 = sadd.s32 (!%p228_p10), %s1054_s21, %s774_s16  ;;  %852 = vmatprep.subr.bf16.mxu0 (!%p228_p10), %v967_v1  ;;  %v613_v5 = vadd.s32 (!%p228_p10), %v608_v3, %v607_v2  ;;  %870 = vmatprep.subr.bf16.mxu1 (!%p228_p10), %v1073_v14  ;;  %v1222_v19 = vld [vmem:[%s1343_s4] ss:$0 sm:$0xff] (!%p228_p10) }
  0x14   : > { %p265_p12 = scmp.lt.s32.totalorder (!%p228_p10), %s1195_s8, 2  ;;  %886 = vmatprep.mubr.msk.bf16.mxu1 (!%p228_p10), %vm1074_vm1, %v1073_v14  ;;  %s778_s26 = sshll.u32 (!%p228_p10), %s1195_s8, 7  ;;  %v508_v18 = vadd.s32 (!%p228_p10), 8, %v1213_v16  ;;  %v509_v23 = vadd.s32 (!%p228_p10), 16, %v1213_v16  ;;  %v510_v24 = vadd.s32 (!%p228_p10), 24, %v1213_v16  ;;  %v511_v31 = vadd.s32 (!%p228_p10), 32, %v1213_v16 }
  0x15   : > { %v1216_v17 = vstv (!%p228_p10), %s778_s26  ;;  %v512_v32 = vadd.s32 (!%p228_p10), 40, %v1213_v16  ;;  %v513_v43 = vadd.s32 (!%p228_p10), 48, %v1213_v16  ;;  %v514_v46 = vadd.s32 (!%p228_p10), 56, %v1213_v16 }
  0x16   : > { %853 = vmatpush3.bf16.msra.mxu0 (!%p228_p10), %v967_v1  ;;  %615 = vperm.xlu0 (!%p228_p10), %965, %v613_v5   ;;  %v524_v20 = vadd.s32 (!%p228_p10), %v1216_v17, %v1213_v16  ;;  %v525_v22 = vadd.s32 (!%p228_p10), %v1216_v17, %v508_v18  ;;  %v526_v34 = vadd.s32 (!%p228_p10), %v1216_v17, %v509_v23  ;;  %v515_v56 = vadd.s32 (!%p228_p10), 64, %v1213_v16 }
  0x17   : > { %s266_s11 = scalar_select %p265_p12, %s1195_s8, 2  ;;  %v527_v35 = vadd.s32 %v1216_v17, %v510_v24  ;;  %v528_v41 = vadd.s32 %v1216_v17, %v511_v31  ;;  %v529_v42 = vadd.s32 %v1216_v17, %v512_v32  ;;  %v530_v53 = vadd.s32 %v1216_v17, %v513_v43 }
  0x18   : > { %vm540_vm2 = vcmp.lt.s32.totalorder %v524_v20, 259  ;;  %vm541_vm3 = vcmp.lt.s32.totalorder %v525_v22, 259  ;;  %vm542_vm5 = vcmp.lt.s32.totalorder %v526_v34, 259  ;;  %v531_v55 = vadd.s32 %v1216_v17, %v514_v46  ;;  %s262_s8 = scalar_lea.vmem [#allocation2], %s1182_s13 }
  0x19   : > { %s775_s12 = sshll.u32 %s266_s11, 4  ;;  %vm799_vm4 = vmpackc.low %vm541_vm3, %vm540_vm2  ;;  %vm543_vm6 = vcmp.lt.s32.totalorder %v527_v35, 259  ;;  %vm544_vm8 = vcmp.lt.s32.totalorder %v528_v41, 259  ;;  %vm545_vm9 = vcmp.lt.s32.totalorder %v529_v42, 259  ;;  %v516_v57 = vadd.s32 72, %v1213_v16 }
  0x1a   : > { %p272_p13 = scmp.lt.s32.totalorder %s775_s12, 32  ;;  %vm802_vm7 = vmpackc.low %vm543_vm6, %vm542_vm5  ;;  %vm546_vm11 = vcmp.lt.s32.totalorder %v530_v53, 259  ;;  %v517_v63 = vadd.s32 80, %v1213_v16  ;;  %v518_v0 = vadd.s32 88, %v1213_v16  ;;  %vm547_vm12 = vcmp.lt.s32.totalorder %v531_v55, 259 }
  0x1b   : > { %vm805_vm10 = vmpackc.low %vm545_vm9, %vm544_vm8  ;;  %v532_v3 = vadd.s32 %v1216_v17, %v515_v56  ;;  %v533_v4 = vadd.s32 %v1216_v17, %v516_v57  ;;  %v520_v20 = vadd.s32 104, %v1213_v16  ;;  %v522_v31 = vadd.s32 120, %v1213_v16 }
  0x1c   : > { %s1361_s12 = smov (!%p272_p13, %s775_s12), 32  ;;  %vm808_vm13 = vmpackc.low %vm547_vm12, %vm546_vm11 }
  0x1d   : > { %s776_s14 = sshll.u32 %s1361_s12, 2  ;;  %vm548_vm14 = vcmp.lt.s32.totalorder %v532_v3, 259  ;;  %vm549_vm15 = vcmp.lt.s32.totalorder %v533_v4, 259  ;;  %v539_v41 = vadd.s32 %v1216_v17, %v522_v31 }
  0x1e   : > { %s275_s16 = scalar_lea.vmem %s1341_s2, %s776_s14 }
  0x1f   : > { %v968_v6 = vld [vmem:[%s275_s16] sm:$0xff]   ;;  %v969_v7 = vld [vmem:[%s275_s16 + $0x8] sm:$0xff]   ;;  %v970_v8 = vld [vmem:[%s275_s16 + $0x10] sm:$0xff]   ;;  %vm555_vm8 = vcmp.lt.s32.totalorder %v539_v41, 259 }
  0x20   : > { %854 = vmatprep.mubr.msk.bf16.mxu0 %vm368_vm0, %v968_v6  ;;  %v971_v9 = vld [vmem:[%s275_s16 + $0x18] sm:$0xff]   ;;  %v972_v10 = vld [vmem:[%s275_s16 + $0x20] sm:$0xff]   ;;  %v973_v11 = vld [vmem:[%s275_s16 + $0x28] sm:$0xff]  }
  0x21   : > { %855 = vmatmul.mubr.msk.bf16.vlgmr.msra.gmra.mrb[0].mxu0 %vm368_vm0, %v969_v7  ;;  %v974_v12 = vld [vmem:[%s275_s16 + $0x30] sm:$0xff]   ;;  %v975_v13 = vld [vmem:[%s275_s16 + $0x38] sm:$0xff]  }
  0x22   : > { %858 = vmatprep.mubr.msk.bf16.mxu0 %vm368_vm0, %v970_v8 }
  0x29   : > { %859 = vmatmul.mubr.msk.bf16.gmra.mrb[4].mxu0 %vm368_vm0, %v971_v9 }
  0x2a   : > { %862 = vmatprep.mubr.msk.bf16.mxu0 %vm368_vm0, %v972_v10 }
  0x31   : > { %863 = vmatmul.mubr.msk.bf16.gmra.mrb[8].mxu0 %vm368_vm0, %v973_v11  ;;  %v534_v11 = vadd.s32 %v1216_v17, %v517_v63 }
  0x32   : > { %866 = vmatprep.mubr.msk.bf16.mxu0 %vm368_vm0, %v974_v12  ;;  %v535_v12 = vadd.s32 %v1216_v17, %v518_v0 }
  0x33   : > { %vm550_vm1 = vcmp.lt.s32.totalorder %v534_v11, 259 }
  0x34   : > { %vm551_vm2 = vcmp.lt.s32.totalorder %v535_v12, 259 }
  0x35   : > { %vm814_vm3 = vmpackc.low %vm551_vm2, %vm550_vm1 }
  0x39   : > { %867 = vmatmul.mubr.msk.bf16.gmra.mrb[12].mxu0 %vm368_vm0, %v975_v13  ;;  %v519_v13 = vadd.s32 96, %v1213_v16  ;;  %vm811_vm0 = vmpackc.low %vm549_vm15, %vm548_vm14 }
  0x91   : > { %v611_v34 = vpop.permute.xlu0 %610 }
  0xf4   : > { %v856_v21 = vpop.f32.mrb[0].mxu0 }
  0xf5   : > { %v436_v25 = vadd.f32 %v856_v21, %v1222_v19  ;;  %v427_v26 = vpop.f32.mrb[1].mxu0 }
  0xf6   : > { %v428_v27 = vadd.f32 %v1222_v19, %v427_v26  ;;  %v857_v28 = vpop.f32.mrb[2].mxu0  ;;  %v536_v26 = vadd.s32 %v1216_v17, %v519_v13 }
  0xf7   : > { %v439_v29 = vadd.f32 %v857_v28, %v1222_v19  ;;  %v430_v30 = vpop.f32.mrb[3].mxu0  ;;  %v492_v36 = vmax.f32 %v436_v25, 0.0 }
  0xf8   : > { %v431_v33 = vadd.f32 %v1222_v19, %v430_v30  ;;  %v490_v38 = vmax.f32 %v428_v27, 0.0  ;;  %v521_v30 = vadd.s32 112, %v1213_v16 }
  0xf9   : > { %v493_v37 = vmax.f32 %v439_v29, 0.0  ;;  %v537_v29 = vadd.s32 %v1216_v17, %v520_v20 }
  0xfa   : > { %v491_v39 = vmax.f32 %v431_v33, 0.0 }
  0xfb   : > { %v803_v40 = vpack.c.bf16 %v493_v37, %v492_v36  ;;  %v605_v37 = vand.u32 127, %v506_v15  ;;  %vm553_vm5 = vcmp.lt.s32.totalorder %v537_v29, 259 }
  0xfc   : > { %v800_v44 = vpack.c.bf16 %v491_v39, %v490_v38  ;;  %v860_v45 = vpop.f32.mrb[4].mxu0 }
  0xfd   : > { %v452_v47 = vadd.f32 %v860_v45, %v1222_v19  ;;  %v443_v48 = vpop.f32.mrb[5].mxu0  ;;  %v606_v45 = vadd.s32 %v605_v37, %v1216_v17 }
  0xfe   : > { %v444_v49 = vadd.f32 %v1222_v19, %v443_v48  ;;  %v861_v50 = vpop.f32.mrb[6].mxu0  ;;  %871 = vmatpush3.bf16.msk.msra.mxu1 %vm799_vm4, %v800_v44  ;;  %vm552_vm4 = vcmp.lt.s32.totalorder %v536_v26, 259 }
  0xff   : > { %v455_v51 = vadd.f32 %v861_v50, %v1222_v19  ;;  %v446_v52 = vpop.f32.mrb[7].mxu0  ;;  %872 = vmatprep.subr.bf16.mxu1 %v1073_v14  ;;  %v496_v58 = vmax.f32 %v452_v47, 0.0  ;;  %v616_v47 = vpop.permute.xlu0 %615  ;;  %vm817_vm6 = vmpackc.low %vm553_vm5, %vm552_vm4  ;;  %vm612_vm9 = vcmp.ge.s32.totalorder %v606_v45, %v611_v34 }
 0x100   : > { %v447_v54 = vadd.f32 %v1222_v19, %v446_v52  ;;  %v494_v60 = vmax.f32 %v444_v49, 0.0 }
 0x101   : > { %v497_v59 = vmax.f32 %v455_v51, 0.0 }
 0x102   : > { %v495_v61 = vmax.f32 %v447_v54, 0.0  ;;  %873 = vmatpush3.bf16.msk.msra.mxu1 %vm802_vm7, %v803_v40  ;;  %v538_v40 = vadd.s32 %v1216_v17, %v521_v30  ;;  %v1075_v17 = vmov 1.0|1.0  }
 0x103   : > { %v809_v62 = vpack.c.bf16 %v497_v59, %v496_v58  ;;  %874 = vmatprep.subr.bf16.mxu1 %v1073_v14 }
 0x104   : > { %v806_v1 = vpack.c.bf16 %v495_v61, %v494_v60  ;;  %v864_v2 = vpop.f32.mrb[8].mxu0  ;;  %vm554_vm7 = vcmp.lt.s32.totalorder %v538_v40, 259 }
 0x105   : > { %v468_v5 = vadd.f32 %v864_v2, %v1222_v19  ;;  %v459_v6 = vpop.f32.mrb[9].mxu0  ;;  %vm820_vm11 = vmpackc.low %vm555_vm8, %vm554_vm7 }
 0x106   : > { %v460_v7 = vadd.f32 %v1222_v19, %v459_v6  ;;  %v865_v8 = vpop.f32.mrb[10].mxu0  ;;  %875 = vmatpush3.bf16.msk.msra.mxu1 %vm805_vm10, %v806_v1  ;;  %vm617_vm10 = vcmp.lt.s32.totalorder %v606_v45, %v616_v47 }
 0x107   : > { %v471_v9 = vadd.f32 %v865_v8, %v1222_v19  ;;  %v462_v10 = vpop.f32.mrb[11].mxu0  ;;  %876 = vmatprep.subr.bf16.mxu1 %v1073_v14  ;;  %v500_v21 = vmax.f32 %v468_v5, 0.0  ;;  %vm618_vm12 = vmand %vm612_vm9, %vm617_vm10 }
 0x108   : > { %v463_v18 = vadd.f32 %v1222_v19, %v462_v10  ;;  %v498_v23 = vmax.f32 %v460_v7, 0.0 }
 0x109   : > { %v501_v22 = vmax.f32 %v471_v9, 0.0 }
 0x10a   : > { %v499_v24 = vmax.f32 %v463_v18, 0.0  ;;  %877 = vmatpush3.bf16.msk.msra.mxu1 %vm808_vm13, %v809_v62  ;;  %vm823_vm13 = vmpackc.low %vm618_vm12, %vm618_vm12 }
 0x10b   : > { %v815_v25 = vpack.c.bf16 %v501_v22, %v500_v21  ;;  %878 = vmatprep.subr.bf16.mxu1 %v1073_v14 }
 0x10c   : > { %v812_v27 = vpack.c.bf16 %v499_v24, %v498_v23  ;;  %v868_v28 = vpop.f32.mrb[12].mxu0 }
 0x10d   : > { %v484_v32 = vadd.f32 %v868_v28, %v1222_v19  ;;  %v475_v33 = vpop.f32.mrb[13].mxu0 }
 0x10e   : > { %v476_v35 = vadd.f32 %v1222_v19, %v475_v33  ;;  %v869_v36 = vpop.f32.mrb[14].mxu0  ;;  %879 = vmatpush3.bf16.msk.msra.mxu1 %vm811_vm0, %v812_v27 }
 0x10f   : > { %v487_v38 = vadd.f32 %v869_v36, %v1222_v19  ;;  %v478_v39 = vpop.f32.mrb[15].mxu0  ;;  %880 = vmatprep.subr.bf16.mxu1 %v1073_v14  ;;  %v504_v42 = vmax.f32 %v484_v32, 0.0 }
 0x110   : > { %v479_v16 = vadd.f32 %v1222_v19, %v478_v39  ;;  %v502_v44 = vmax.f32 %v476_v35, 0.0 }
 0x111   : > { %v505_v43 = vmax.f32 %v487_v38, 0.0 }
 0x112   : > { %v503_v15 = vmax.f32 %v479_v16, 0.0  ;;  %881 = vmatpush3.bf16.msk.msra.mxu1 %vm814_vm3, %v815_v25 }
 0x113   : > { %v821_v46 = vpack.c.bf16 %v505_v43, %v504_v42  ;;  %882 = vmatprep.subr.bf16.mxu1 %v1073_v14 }
 0x114   : > { %v818_v48 = vpack.c.bf16 %v503_v15, %v502_v44 }
 0x116   : > { %883 = vmatpush3.bf16.msk.msra.mxu1 %vm817_vm6, %v818_v48 }
 0x117   : > { %884 = vmatprep.subr.bf16.mxu1 %v1073_v14 }
 0x11a   : > { %885 = vmatpush3.bf16.msk.msra.mxu1 %vm820_vm11, %v821_v46 }
 0x11d   : > { %887 = vmatmul.mubr.msk.bf16.vlgmr.msra.gmra.mrb[0].mxu1 %vm823_vm13, %v1075_v17 }
 0x1ed   : > { %673 = sbr.rel (%p825_p0) target bundleno = 500 (0x1f4), region = 44 }
 0x1f0   : > { %v664_v19 = vpop.f32.mrb[0].mxu1 }
 0x1f1   : > { %v888_v49 = vpop.f32.mrb[1].mxu1  ;;  %674 = vst [vmem:[%s262_s8] sm:$0xff] (!%p825_p0), %v664_v19 }
 0x1f2   : > { %v667_v50 = vpop.f32.mrb[2].mxu1 }
 0x1f3   : > { %v889_v51 = vpop.f32.mrb[3].mxu1 }
 0x1f4 PF: > { %p826_p1 = scmp.eq.s32.totalorder %s1054_s21, 0 }
 0x1f6   : > { %678 = sbr.rel (%p826_p1) target bundleno = 509 (0x1fd), region = 48 }
 0x1f8   : > { %v679_v14 = vld [vmem:[%s262_s8] sm:$0xff] (!%p826_p1) }
 0x1f9   : > { %v680_v52 = vadd.f32 (!%p826_p1), %v679_v14, %v664_v19 }
 0x1fb   : > { %681 = vst [vmem:[%s262_s8] sm:$0xff] (!%p826_p1), %v680_v52 }
 0x1fd PF: > { %s828_s11 = sshll.u32 %s1058_s22, 7  ;;  %s696_s15 = sshll.u32 %s262_s8, 4  ;;  %s697_s15 = int_to_ptr.vmem [resolvable:$true] %s696_s15 }
 0x1fe   : > { %s1290_s13 = scalar_lea.hbm %s1344_s5, %s828_s11  ;;  %s683_s17 = scalar_lea.sflag [#allocation3], %s260_s10 }
 0x1ff   : > { %s976_s16 = scalar_lea.vmem %s697_s15, 128  ;;  %s1076_s21 = smov [#allocation2]  }
 0x200   : > { %p977_p2 = scmp.ne.s32.totalorder %s697_s15, %s976_s16  ;;  %s980_s26 = sshll.u32 %s1076_s21, 4  ;;  %s981_s26 = int_to_ptr.vmem [resolvable:$false] %s980_s26 }
 0x201   : > { %s982_s27 = scalar_lea.vmem %s981_s26, 256  ;;  %p983_p6 = scmp.lt.s32.totalorder %s697_s15, %s981_s26 }
 0x202   : > { %p978_p4 = pnand %p977_p2, %p1156_p3  ;;  %p984_p7 = scmp.lt.s32.totalorder %s982_s27, %s976_s16 }
 0x204   : > { %p979_p5 = pneg %p978_p4  ;;  %p985_p8 = por %p984_p7, %p983_p6 }
 0x206   : > { %p986_p10 = pnand %p985_p8, %p979_p5 }
 0x208   : > { %989 = shalt.err (!%p986_p10)
}
 0x209   : > { %s990_s22 = scalar_lea.hbm %s1290_s13, 128  ;;  %s994_s8 = scalar_lea.hbm %s1344_s5, 256 }
 0x20a   : > { %p991_p11 = scmp.ne.s32.totalorder %s1290_s13, %s990_s22  ;;  %p995_p0 = scmp.lt.u32.totalorder %s1290_s13, %s1344_s5 }
 0x20b   : > { %p996_p1 = scmp.lt.u32.totalorder %s994_s8, %s990_s22  ;;  %p998_p4 = scmp.lt.u32.totalorder %s990_s22, %s1290_s13 }
 0x20c   : > { %p992_p12 = pnand %p991_p11, %p1156_p3 }
 0x20d   : > { %p997_p2 = por %p996_p1, %p995_p0 }
 0x20e   : > { %p993_p13 = pneg %p992_p12 }
 0x20f   : > { %p999_p5 = por %p998_p4, %p997_p2 }
 0x211   : > { %p1000_p6 = pnand %p999_p5, %p993_p13 }
 0x213   : > { %1003 = shalt.err (!%p1000_p6)
}
 0x214   : > { %890 = dma.vmem_to_hbm [thread:$0]  (%p1156_p3), %s697_s15, 128, %s1290_s13, %s683_s17  }
 0x215 PF: > { %p896_p7 = scmp.ge.s32.totalorder %s1070_s25, 2  ;;  %s708_s14 = sand.u32 1, %s1042_s18  }
 0x216   : > { %s709_s16 = scalar_lea.sflag [#allocation3], %s708_s14 }
 0x217   : > { %p893_p8 = pnand %p896_p7, %p1166_p9 }
 0x219   : > { %1037 = dma.done.wait (!%p893_p8), %s709_s16, 128  }
 0x21a   : > { %1039 = vsyncadd (!%p893_p8), %s709_s16, 4294967168  ;;  %s18_s25 = sadd.s32 1, %s1070_s25   ;;  %s1347_s18 = smov %s1046_s19 }
 0x21b   : > { %p15_p10 = scmp.ge.s32.totalorder %s18_s25, 6   ;;  %s1348_s19 = smov %s1050_s20 }
 0x21c   : > { %s1349_s20 = smov %s1174_s9  ;;  %s1350_s21 = smov %s1062_s23 }
 0x21d   : > { %s1351_s22 = smov %s1066_s24  ;;  %s1352_s23 = smov %s1355_s28 }
 0x21e   : > { %s1353_s24 = smov %s1359_s29  ;;  %17 = sbr.rel (!%p15_p10) target bundleno = 5 (0x5), region = 83 }
 0x225   :  { %714 = vsyncpa [#allocation3], 1 }
 0x226   :  { %716 = vsyncpa [#allocation3 + $0x1], 1 }

</bundles_post_ra>
